<compile_context>
chip_gen: v7x
topology: tpu7x:2x2x1
jax: 0.10.0
libtpu: 0.0.40
codegen_flags: <defaults>
</compile_context>

<pallas_src>
import functools

import jax
import jax.numpy as jnp
from jax.experimental import pallas as pl
from jax.experimental.pallas import tpu as pltpu


# TODO(synk): the PyTorch zero-pad branch for a t_net whose spatial output
# differs from the input never triggers with a 1x1-conv t_net (shapes always
# match), so it is not reproduced here.

_LANES = 128
_CHUNK_ROWS = 256      # strip-mine granularity inside a DMA tile


def _shm_kernel(params_ref, x_ref, trimap_ref, alpha_ref):
    """params_ref: (19,) f32 in SMEM (scalar prefetch).
       x_ref: (1, 3, tile_rows, 128) in VMEM (native input dtype)."""
    p = params_ref
    # t_net 1x1 conv 3->3: p[in*3 + out] = W_t[in, out], p[9 + out] = b_t[out]
    wt = [p[i] for i in range(9)]
    bt = [p[9 + i] for i in range(3)]
    # m_net 1x1 conv 6->1: p[12:18] = W_m[:, 0], p[18] = b_m
    wm = [p[12 + i] for i in range(6)]
    bm = p[18]

    tile_rows = x_ref.shape[2]
    chunk = min(_CHUNK_ROWS, tile_rows)
    n_full = tile_rows // chunk
    rem = tile_rows - n_full * chunk

    def process(start, size):
        rs = pl.ds(start, size)
        x0 = x_ref[0, 0, rs, :].astype(jnp.float32)
        x1 = x_ref[0, 1, rs, :].astype(jnp.float32)
        x2 = x_ref[0, 2, rs, :].astype(jnp.float32)

        # --- t_net: 1x1 conv 3->3 as scalar-broadcast FMAs on the VPU.
        t0 = wt[0] * x0 + wt[3] * x1 + wt[6] * x2 + bt[0]
        t1 = wt[1] * x0 + wt[4] * x1 + wt[7] * x2 + bt[1]
        t2 = wt[2] * x0 + wt[5] * x1 + wt[8] * x2 + bt[2]

        trimap_ref[0, 0, rs, :] = t0.astype(trimap_ref.dtype)
        trimap_ref[0, 1, rs, :] = t1.astype(trimap_ref.dtype)
        trimap_ref[0, 2, rs, :] = t2.astype(trimap_ref.dtype)

        # --- softmax over the 3 channels (PyTorch dim=1); exact division
        #     (memory-bound kernel, exact normalization is free).
        m = jnp.maximum(jnp.maximum(t0, t1), t2)
        e0 = jnp.exp(t0 - m)
        e1 = jnp.exp(t1 - m)
        e2 = jnp.exp(t2 - m)
        inv = 1.0 / (e0 + e1 + e2)
        sm0 = e0 * inv        # bg
        sm1 = e1 * inv        # fg
        sm2 = e2 * inv        # unsure

        # --- m_net: 1x1 conv 6->1 on cat(x, softmax(trimap)).
        alpha_r = (wm[0] * x0 + wm[1] * x1 + wm[2] * x2
                   + wm[3] * sm0 + wm[4] * sm1 + wm[5] * sm2 + bm)

        # --- alpha_p = fg + unsure * alpha_r
        alpha_ref[0, 0, rs, :] = (sm1 + sm2 * alpha_r).astype(alpha_ref.dtype)

    # Strip-mine the DMA tile so the live intermediate set stays small.
    @pl.loop(0, n_full)
    def _(i):
        process(pl.multiple_of(i * chunk, chunk), chunk)

    if rem > 0:                      # static tail (only when tile is full-extent)
        process(n_full * chunk, rem)


def _round_up(n, m):
    return (n + m - 1) // m * m


@functools.partial(jax.jit, static_argnames=("max_tile_rows",))
def shm_forward(x_nchw, w_t, b_t, w_m, b_m, *, max_tile_rows=2048):
    """x_nchw: (B, 3, H, W) any float/int dtype.
       Returns (trimap (B,3,H,W) f32, alpha_p (B,1,H,W) f32)."""
    B, C, H, W = x_nchw.shape
    assert C == 3
    hw = H * W

    # Channel-major pixel tiling (B, 3, rows, 128).  Pad only to a multiple
    # of 128 (needed for the reshape; < 128 extra pixels), NOT to a whole
    # number of tiles — the ragged last grid block is masked by Pallas.
    rows = pl.cdiv(hw, _LANES)
    hw_pad = rows * _LANES
    x = x_nchw.reshape(B, 3, hw)
    if hw_pad != hw:
        x = jnp.pad(x, ((0, 0), (0, 0), (0, hw_pad - hw)))
    x = x.reshape(B, 3, rows, _LANES)

    # Tile-row selection: whole image in one block when it fits; otherwise
    # 8-aligned tiles.  With B == 1, split the row axis so 2-TC chips (v7x)
    # see >= 2 parallel blocks.
    limit = max_tile_rows
    if B == 1 and rows > 8:
        limit = min(limit, _round_up(pl.cdiv(rows, 2), 8))
    if rows <= limit:
        tile_rows = rows                       # full-extent block (always legal)
    else:
        tile_rows = min(_round_up(limit, 8), rows)
    n_row_blocks = pl.cdiv(rows, tile_rows)

    # Pack all 1x1-conv weights/biases into one small scalar table (SMEM via
    # scalar prefetch).
    params = jnp.concatenate([
        w_t.astype(jnp.float32).reshape(-1),   # [ 0: 9]  W_t[in, out]
        b_t.astype(jnp.float32).reshape(-1),   # [ 9:12]  b_t[out]
        w_m.astype(jnp.float32).reshape(-1),   # [12:18]  W_m[in6, 0]
        b_m.astype(jnp.float32).reshape(-1),   # [18]     b_m
    ])

    # Explicit VMEM budget: double-buffered in/out blocks + chunk temporaries,
    # clamped to stay safely under every generation's physical VMEM.
    blk_bytes = (3 * tile_rows * _LANES * x.dtype.itemsize
                 + 4 * tile_rows * _LANES * 4)
    vmem_limit = int(min(max(2 * blk_bytes + (8 << 20), 32 << 20), 48 << 20))

    grid = (B, n_row_blocks)
    trimap4, alpha4 = pl.pallas_call(
        _shm_kernel,
        out_shape=(
            jax.ShapeDtypeStruct((B, 3, rows, _LANES), jnp.float32),
            jax.ShapeDtypeStruct((B, 1, rows, _LANES), jnp.float32),
        ),
        grid_spec=pltpu.PrefetchScalarGridSpec(
            num_scalar_prefetch=1,
            grid=grid,
            in_specs=[
                pl.BlockSpec((1, 3, tile_rows, _LANES),
                             lambda b, i, p: (b, 0, i, 0)),          # x tile
            ],
            out_specs=[
                pl.BlockSpec((1, 3, tile_rows, _LANES),
                             lambda b, i, p: (b, 0, i, 0)),          # trimap
                pl.BlockSpec((1, 1, tile_rows, _LANES),
                             lambda b, i, p: (b, 0, i, 0)),          # alpha_p
            ],
        ),
        compiler_params=pltpu.CompilerParams(
            dimension_semantics=("parallel", "parallel"),
            vmem_limit_bytes=vmem_limit),
    )(params, x)

    # Free reshapes back to NCHW (slice only if the pixel axis was padded).
    trimap = trimap4.reshape(B, 3, hw_pad)
    alpha_p = alpha4.reshape(B, 1, hw_pad)
    if hw_pad != hw:
        trimap = trimap[:, :, :hw]
        alpha_p = alpha_p[:, :, :hw]
    return trimap.reshape(B, 3, H, W), alpha_p.reshape(B, 1, H, W)


def _reference(x_nchw, w_t, b_t, w_m, b_m):
    """Pure-JAX reference mirroring the PyTorch forward."""
    x = jnp.transpose(x_nchw.astype(jnp.float32), (0, 2, 3, 1))      # NHWC
    trimap = jnp.einsum("bhwc,co->bhwo", x, w_t,
                        precision=jax.lax.Precision.HIGHEST) + b_t   # t_net
    sm = jax.nn.softmax(trimap, axis=-1)                             # dim=1
    m_in = jnp.concatenate([x, sm], axis=-1)                         # (B,H,W,6)
    alpha_r = jnp.einsum("bhwc,co->bhwo", m_in, w_m,
                         precision=jax.lax.Precision.HIGHEST) + b_m  # m_net
    fg = sm[..., 1:2]
    unsure = sm[..., 2:3]
    alpha_p = fg + unsure * alpha_r
    return (jnp.transpose(trimap, (0, 3, 1, 2)),
            jnp.transpose(alpha_p, (0, 3, 1, 2)))


if __name__ == "__main__":
    key = jax.random.PRNGKey(0)
    kx, kwt, kbt, kwm, kbm, kx2 = jax.random.split(key, 6)

    # Deterministic synthetic parameters (shapes implied by the module):
    # t_net: 1x1 conv 3->3 ; m_net: 1x1 conv 6->1
    w_t = jax.random.normal(kwt, (3, 3), dtype=jnp.float32) * 0.5
    b_t = jax.random.normal(kbt, (3,), dtype=jnp.float32) * 0.1
    w_m = jax.random.normal(kwm, (6, 1), dtype=jnp.float32) * 0.5
    b_m = jax.random.normal(kbm, (1,), dtype=jnp.float32) * 0.1

    # Case 1: small aligned batch.
    B, C, H, W = 2, 3, 16, 16
    x = jax.random.normal(kx, (B, C, H, W), dtype=jnp.float32)
    trimap, alpha_p = shm_forward(x, w_t, b_t, w_m, b_m)
    jax.block_until_ready((trimap, alpha_p))
    trimap_ref, alpha_ref = _reference(x, w_t, b_t, w_m, b_m)
    assert trimap.shape == (B, 3, H, W) and alpha_p.shape == (B, 1, H, W)
    assert jnp.allclose(trimap, trimap_ref, atol=1e-5, rtol=1e-5)
    assert jnp.allclose(alpha_p, alpha_ref, atol=1e-5, rtol=1e-5)

    # Case 2: B == 1 with a ragged row grid (exercises the masked last block
    # and the 2-TC row split), small tile cap to keep shapes tiny.
    x2 = jax.random.normal(kx2, (1, 3, 40, 64), dtype=jnp.float32)
    trimap2, alpha2 = shm_forward(x2, w_t, b_t, w_m, b_m, max_tile_rows=16)
    jax.block_until_ready((trimap2, alpha2))
    trimap2_ref, alpha2_ref = _reference(x2, w_t, b_t, w_m, b_m)
    assert jnp.allclose(trimap2, trimap2_ref, atol=1e-5, rtol=1e-5)
    assert jnp.allclose(alpha2, alpha2_ref, atol=1e-5, rtol=1e-5)

    print("KERNEL_OK")
</pallas_src>

<mosaic_0001>
module attributes {stable_mosaic.version = 11 : i64} {
  func.func @_shm_kernel(%arg0: i32, %arg1: i32, %arg2: memref<19xf32, #tpu.memory_space<smem>>, %arg3: memref<1x3x2x128xf32, #tpu.memory_space<vmem>>, %arg4: memref<1x3x2x128xf32, #tpu.memory_space<vmem>>, %arg5: memref<1x1x2x128xf32, #tpu.memory_space<vmem>>) attributes {dimension_semantics = [#tpu.dimension_semantics<parallel>, #tpu.dimension_semantics<parallel>], iteration_bounds = array<i64: 2, 1>, scalar_prefetch = 1 : i64, scratch_operands = 0 : i64, tpu.core_type = #tpu.core_type<tc>, window_params = [{transform_indices = @transform_0, window_bounds = array<i64: 1, 3, 2, 128>}, {transform_indices = @transform_1, window_bounds = array<i64: 1, 3, 2, 128>}, {transform_indices = @transform_2, window_bounds = array<i64: 1, 1, 2, 128>}]} {
    %c0 = arith.constant 0 : index
    %0 = memref.load %arg2[%c0] : memref<19xf32, #tpu.memory_space<smem>>
    %c1 = arith.constant 1 : index
    %1 = memref.load %arg2[%c1] : memref<19xf32, #tpu.memory_space<smem>>
    %c2 = arith.constant 2 : index
    %2 = memref.load %arg2[%c2] : memref<19xf32, #tpu.memory_space<smem>>
    %c3 = arith.constant 3 : index
    %3 = memref.load %arg2[%c3] : memref<19xf32, #tpu.memory_space<smem>>
    %c4 = arith.constant 4 : index
    %4 = memref.load %arg2[%c4] : memref<19xf32, #tpu.memory_space<smem>>
    %c5 = arith.constant 5 : index
    %5 = memref.load %arg2[%c5] : memref<19xf32, #tpu.memory_space<smem>>
    %c6 = arith.constant 6 : index
    %6 = memref.load %arg2[%c6] : memref<19xf32, #tpu.memory_space<smem>>
    %c7 = arith.constant 7 : index
    %7 = memref.load %arg2[%c7] : memref<19xf32, #tpu.memory_space<smem>>
    %c8 = arith.constant 8 : index
    %8 = memref.load %arg2[%c8] : memref<19xf32, #tpu.memory_space<smem>>
    %c9 = arith.constant 9 : index
    %9 = memref.load %arg2[%c9] : memref<19xf32, #tpu.memory_space<smem>>
    %c10 = arith.constant 10 : index
    %10 = memref.load %arg2[%c10] : memref<19xf32, #tpu.memory_space<smem>>
    %c11 = arith.constant 11 : index
    %11 = memref.load %arg2[%c11] : memref<19xf32, #tpu.memory_space<smem>>
    %c12 = arith.constant 12 : index
    %12 = memref.load %arg2[%c12] : memref<19xf32, #tpu.memory_space<smem>>
    %c13 = arith.constant 13 : index
    %13 = memref.load %arg2[%c13] : memref<19xf32, #tpu.memory_space<smem>>
    %c14 = arith.constant 14 : index
    %14 = memref.load %arg2[%c14] : memref<19xf32, #tpu.memory_space<smem>>
    %c15 = arith.constant 15 : index
    %15 = memref.load %arg2[%c15] : memref<19xf32, #tpu.memory_space<smem>>
    %c16 = arith.constant 16 : index
    %16 = memref.load %arg2[%c16] : memref<19xf32, #tpu.memory_space<smem>>
    %c17 = arith.constant 17 : index
    %17 = memref.load %arg2[%c17] : memref<19xf32, #tpu.memory_space<smem>>
    %c18 = arith.constant 18 : index
    %18 = memref.load %arg2[%c18] : memref<19xf32, #tpu.memory_space<smem>>
    %c0_i32 = arith.constant 0 : i32
    %c1_i32 = arith.constant 1 : i32
    %19 = arith.muli %c0_i32, %c1_i32 : i32
    %c0_i32_0 = arith.constant 0 : i32
    %20 = arith.addi %c0_i32_0, %19 : i32
    %c2_i32 = arith.constant 2 : i32
    %21 = arith.muli %20, %c2_i32 : i32
    %22 = tpu.assume_multiple %21, 2 : i32
    %c0_1 = arith.constant 0 : index
    %c0_2 = arith.constant 0 : index
    %23 = arith.index_cast %22 : i32 to index
    %c0_3 = arith.constant 0 : index
    %24 = vector.load %arg3[%c0_1, %c0_2, %23, %c0_3] : memref<1x3x2x128xf32, #tpu.memory_space<vmem>>, vector<1x1x2x128xf32>
    %25 = vector.shape_cast %24 : vector<1x1x2x128xf32> to vector<2x128xf32>
    %c0_4 = arith.constant 0 : index
    %c1_5 = arith.constant 1 : index
    %26 = arith.index_cast %22 : i32 to index
    %c0_6 = arith.constant 0 : index
    %27 = vector.load %arg3[%c0_4, %c1_5, %26, %c0_6] : memref<1x3x2x128xf32, #tpu.memory_space<vmem>>, vector<1x1x2x128xf32>
    %28 = vector.shape_cast %27 : vector<1x1x2x128xf32> to vector<2x128xf32>
    %c0_7 = arith.constant 0 : index
    %c2_8 = arith.constant 2 : index
    %29 = arith.index_cast %22 : i32 to index
    %c0_9 = arith.constant 0 : index
    %30 = vector.load %arg3[%c0_7, %c2_8, %29, %c0_9] : memref<1x3x2x128xf32, #tpu.memory_space<vmem>>, vector<1x1x2x128xf32>
    %31 = vector.shape_cast %30 : vector<1x1x2x128xf32> to vector<2x128xf32>
    %32 = vector.broadcast %0 : f32 to vector<2x128xf32>
    %33 = arith.mulf %32, %25 : vector<2x128xf32>
    %34 = vector.broadcast %3 : f32 to vector<2x128xf32>
    %35 = arith.mulf %34, %28 : vector<2x128xf32>
    %36 = arith.addf %33, %35 : vector<2x128xf32>
    %37 = vector.broadcast %6 : f32 to vector<2x128xf32>
    %38 = arith.mulf %37, %31 : vector<2x128xf32>
    %39 = arith.addf %36, %38 : vector<2x128xf32>
    %40 = vector.broadcast %9 : f32 to vector<2x128xf32>
    %41 = arith.addf %39, %40 : vector<2x128xf32>
    %42 = vector.broadcast %1 : f32 to vector<2x128xf32>
    %43 = arith.mulf %42, %25 : vector<2x128xf32>
    %44 = vector.broadcast %4 : f32 to vector<2x128xf32>
    %45 = arith.mulf %44, %28 : vector<2x128xf32>
    %46 = arith.addf %43, %45 : vector<2x128xf32>
    %47 = vector.broadcast %7 : f32 to vector<2x128xf32>
    %48 = arith.mulf %47, %31 : vector<2x128xf32>
    %49 = arith.addf %46, %48 : vector<2x128xf32>
    %50 = vector.broadcast %10 : f32 to vector<2x128xf32>
    %51 = arith.addf %49, %50 : vector<2x128xf32>
    %52 = vector.broadcast %2 : f32 to vector<2x128xf32>
    %53 = arith.mulf %52, %25 : vector<2x128xf32>
    %54 = vector.broadcast %5 : f32 to vector<2x128xf32>
    %55 = arith.mulf %54, %28 : vector<2x128xf32>
    %56 = arith.addf %53, %55 : vector<2x128xf32>
    %57 = vector.broadcast %8 : f32 to vector<2x128xf32>
    %58 = arith.mulf %57, %31 : vector<2x128xf32>
    %59 = arith.addf %56, %58 : vector<2x128xf32>
    %60 = vector.broadcast %11 : f32 to vector<2x128xf32>
    %61 = arith.addf %59, %60 : vector<2x128xf32>
    %c0_10 = arith.constant 0 : index
    %c0_11 = arith.constant 0 : index
    %62 = arith.index_cast %22 : i32 to index
    %c0_12 = arith.constant 0 : index
    %63 = vector.load %arg4[%c0_10, %c0_11, %62, %c0_12] : memref<1x3x2x128xf32, #tpu.memory_space<vmem>>, vector<1x1x2x128xf32>
    %64 = vector.shape_cast %63 : vector<1x1x2x128xf32> to vector<2x128xf32>
    %65 = vector.shape_cast %41 : vector<2x128xf32> to vector<1x1x2x128xf32>
    tpu.vector_store %arg4[%c0_10, %c0_11, %62, %c0_12], %65 {strides = array<i32>} : memref<1x3x2x128xf32, #tpu.memory_space<vmem>>, vector<1x1x2x128xf32>,
    %c0_13 = arith.constant 0 : index
    %c1_14 = arith.constant 1 : index
    %66 = arith.index_cast %22 : i32 to index
    %c0_15 = arith.constant 0 : index
    %67 = vector.load %arg4[%c0_13, %c1_14, %66, %c0_15] : memref<1x3x2x128xf32, #tpu.memory_space<vmem>>, vector<1x1x2x128xf32>
    %68 = vector.shape_cast %67 : vector<1x1x2x128xf32> to vector<2x128xf32>
    %69 = vector.shape_cast %51 : vector<2x128xf32> to vector<1x1x2x128xf32>
    tpu.vector_store %arg4[%c0_13, %c1_14, %66, %c0_15], %69 {strides = array<i32>} : memref<1x3x2x128xf32, #tpu.memory_space<vmem>>, vector<1x1x2x128xf32>,
    %c0_16 = arith.constant 0 : index
    %c2_17 = arith.constant 2 : index
    %70 = arith.index_cast %22 : i32 to index
    %c0_18 = arith.constant 0 : index
    %71 = vector.load %arg4[%c0_16, %c2_17, %70, %c0_18] : memref<1x3x2x128xf32, #tpu.memory_space<vmem>>, vector<1x1x2x128xf32>
    %72 = vector.shape_cast %71 : vector<1x1x2x128xf32> to vector<2x128xf32>
    %73 = vector.shape_cast %61 : vector<2x128xf32> to vector<1x1x2x128xf32>
    tpu.vector_store %arg4[%c0_16, %c2_17, %70, %c0_18], %73 {strides = array<i32>} : memref<1x3x2x128xf32, #tpu.memory_space<vmem>>, vector<1x1x2x128xf32>,
    %74 = arith.maximumf %41, %51 : vector<2x128xf32>
    %75 = arith.maximumf %74, %61 : vector<2x128xf32>
    %76 = arith.subf %41, %75 : vector<2x128xf32>
    %77 = math.exp %76 : vector<2x128xf32>
    %78 = arith.subf %51, %75 : vector<2x128xf32>
    %79 = math.exp %78 : vector<2x128xf32>
    %80 = arith.subf %61, %75 : vector<2x128xf32>
    %81 = math.exp %80 : vector<2x128xf32>
    %82 = arith.addf %77, %79 : vector<2x128xf32>
    %83 = arith.addf %82, %81 : vector<2x128xf32>
    %cst = arith.constant 1.000000e+00 : f32
    %84 = vector.broadcast %cst : f32 to vector<2x128xf32>
    %85 = arith.divf %84, %83 : vector<2x128xf32>
    %86 = arith.mulf %77, %85 : vector<2x128xf32>
    %87 = arith.mulf %79, %85 : vector<2x128xf32>
    %88 = arith.mulf %81, %85 : vector<2x128xf32>
    %89 = vector.broadcast %12 : f32 to vector<2x128xf32>
    %90 = arith.mulf %89, %25 : vector<2x128xf32>
    %91 = vector.broadcast %13 : f32 to vector<2x128xf32>
    %92 = arith.mulf %91, %28 : vector<2x128xf32>
    %93 = arith.addf %90, %92 : vector<2x128xf32>
    %94 = vector.broadcast %14 : f32 to vector<2x128xf32>
    %95 = arith.mulf %94, %31 : vector<2x128xf32>
    %96 = arith.addf %93, %95 : vector<2x128xf32>
    %97 = vector.broadcast %15 : f32 to vector<2x128xf32>
    %98 = arith.mulf %97, %86 : vector<2x128xf32>
    %99 = arith.addf %96, %98 : vector<2x128xf32>
    %100 = vector.broadcast %16 : f32 to vector<2x128xf32>
    %101 = arith.mulf %100, %87 : vector<2x128xf32>
    %102 = arith.addf %99, %101 : vector<2x128xf32>
    %103 = vector.broadcast %17 : f32 to vector<2x128xf32>
    %104 = arith.mulf %103, %88 : vector<2x128xf32>
    %105 = arith.addf %102, %104 : vector<2x128xf32>
    %106 = vector.broadcast %18 : f32 to vector<2x128xf32>
    %107 = arith.addf %105, %106 : vector<2x128xf32>
    %108 = arith.mulf %88, %107 : vector<2x128xf32>
    %109 = arith.addf %87, %108 : vector<2x128xf32>
    %c0_19 = arith.constant 0 : index
    %c0_20 = arith.constant 0 : index
    %110 = arith.index_cast %22 : i32 to index
    %c0_21 = arith.constant 0 : index
    %111 = vector.load %arg5[%c0_19, %c0_20, %110, %c0_21] : memref<1x1x2x128xf32, #tpu.memory_space<vmem>>, vector<1x1x2x128xf32>
    %112 = vector.shape_cast %111 : vector<1x1x2x128xf32> to vector<2x128xf32>
    %113 = vector.shape_cast %109 : vector<2x128xf32> to vector<1x1x2x128xf32>
    tpu.vector_store %arg5[%c0_19, %c0_20, %110, %c0_21], %113 {strides = array<i32>} : memref<1x1x2x128xf32, #tpu.memory_space<vmem>>, vector<1x1x2x128xf32>,
    %c1_i32_22 = arith.constant 1 : i32
    return
  }
  func.func @transform_0(%arg0: i32, %arg1: i32, %arg2: memref<19xf32, #tpu.memory_space<smem>>) -> (i32, i32, i32, i32) {
    %c0_i32 = arith.constant 0 : i32
    %c0_i32_0 = arith.constant 0 : i32
    %c0_i32_1 = arith.constant 0 : i32
    return %arg0, %c0_i32, %arg1, %c0_i32_0 : i32, i32, i32, i32
  }
  func.func @transform_1(%arg0: i32, %arg1: i32, %arg2: memref<19xf32, #tpu.memory_space<smem>>) -> (i32, i32, i32, i32) {
    %c0_i32 = arith.constant 0 : i32
    %c0_i32_0 = arith.constant 0 : i32
    %c0_i32_1 = arith.constant 0 : i32
    return %arg0, %c0_i32, %arg1, %c0_i32_0 : i32, i32, i32, i32
  }
  func.func @transform_2(%arg0: i32, %arg1: i32, %arg2: memref<19xf32, #tpu.memory_space<smem>>) -> (i32, i32, i32, i32) {
    %c0_i32 = arith.constant 0 : i32
    %c0_i32_0 = arith.constant 0 : i32
    %c0_i32_1 = arith.constant 0 : i32
    return %arg0, %c0_i32, %arg1, %c0_i32_0 : i32, i32, i32, i32
  }
}

</mosaic_0001>

<bundles_post_ra>
// kernel: shm_forward.1
= control target key start
LH: loop header
LB: loop body
LE: loop exit
PB: predicated region body
PF: predicated region fallthrough
CT: control target
= control target key end

     0   :  { %s616_s0 = inlined_call_operand.vmem [shape: f32[19], index: 0, kind: input, shape index: {}]   ;;  %s617_s1 = inlined_call_operand.vmem [shape: f32[2,3,2,128], index: 1, kind: input, shape index: {}]   ;;  %s618_s2 = inlined_call_operand.vmem [shape: f32[2,3,2,128], index: 2, kind: output, shape index: {0}]   ;;  %s619_s3 = inlined_call_operand.vmem [shape: f32[2,1,2,128], index: 3, kind: output, shape index: {1}]  }
   0x1   :  { %s9_s14 = sshll.u32 %s616_s0, 4  ;;  %s10_s14 = int_to_ptr.vmem [resolvable:$true] %s9_s14 }
   0x2   :  { %s496_s15 = scalar_lea.vmem %s10_s14, 16  ;;  %p501_p1 = scmp.lt.s32.totalorder %s10_s14, %s10_s14 }
   0x3   :  { %p497_p0 = scmp.ne.s32.totalorder %s10_s14, %s496_s15  ;;  %p502_p2 = scmp.lt.s32.totalorder %s496_s15, %s496_s15 }
   0x5   :  { %p503_p3 = por %p502_p2, %p501_p1 }
   0x7   :  { %p504_p4 = pnand %p503_p3, %p497_p0 }
   0x9   :  { %507 = shalt.err (!%p504_p4)  }
   0xa   :  { %s534_s16 = smov [#allocation3]  }
   0xb   :  { %12 = dma.vmem_to_smem %s10_s14, 16, %s534_s16, [#allocation2] }
   0xc   :  { %520 = dma.done.wait [#allocation2], 16 }
   0xd   :  { %521 = vsyncadd [#allocation2], 4294967280 }
   0xe   :  { %14 = sfence }
   0xf   :  { %s558_s17 = smov 0   ;;  %s560_s18 = smov 0  }
  0x10   :  { %s562_s19 = smov 0  }
  0x11 LB: > { %s32_s0 = sadd.s32 1, %s528_s18  ;;  %p434_p5 = scmp.ge.s32.totalorder %s532_s19, 1  ;;  %s532_s19 = sphi %s562_s19, %s20_s19   ;;  %s528_s18 = sphi %s560_s18, %s621_s18   ;;  %s524_s17 = sphi %s558_s17, %s620_s17  }
  0x12   : > { %p34_p6 = scmp.ge.s32.totalorder %s32_s0, 2  ;;  %p143_p7 = scmp.lt.s32.totalorder %s532_s19, 3 }
  0x14   : > { %s623_s0 = smov (%p34_p6, %s32_s0), 0  ;;  %p144_p8 = pnand %p434_p5, %p143_p7 }
  0x15   : > { %p178_p9 = scmp.lt.s32.totalorder (!%p144_p8), %s524_s17, 1  ;;  %s201_s20 = sld [smem:[#allocation3]] (!%p144_p8) }
  0x16   : > { %147 = sbr.rel (%p144_p8) target bundleno = 95 (0x5f), region = 24  ;;  %s440_s21 = sld [smem:[#allocation3 + $0x3]] (!%p144_p8) }
  0x17   : > { %s443_s22 = sld [smem:[#allocation3 + $0x6]] (!%p144_p8)  ;;  %s446_s23 = sld [smem:[#allocation3 + $0x9]] (!%p144_p8) }
  0x18   : > { %s438_s25 = sld [smem:[#allocation3 + $0x1]] (!%p144_p8)  ;;  %s441_s29 = sld [smem:[#allocation3 + $0x4]] (!%p144_p8) }
  0x19   : > { %s444_s30 = sld [smem:[#allocation3 + $0x7]] (!%p144_p8)  ;;  %s447_s4 = sld [smem:[#allocation3 + $0xa]] (!%p144_p8) }
  0x1a   : > { %s439_s5 = sld [smem:[#allocation3 + $0x2]] (!%p144_p8)  ;;  %s442_s6 = sld [smem:[#allocation3 + $0x5]] (!%p144_p8) }
  0x1b   : > { %v227_v0 = vstv (!%p144_p8), %s201_s20  ;;  %s445_s7 = sld [smem:[#allocation3 + $0x8]] (!%p144_p8)  ;;  %s448_s8 = sld [smem:[#allocation3 + $0xb]] (!%p144_p8) }
  0x1c   : > { %v229_v4 = vstv (!%p144_p8), %s440_s21  ;;  %s449_s12 = sld [smem:[#allocation3 + $0xc]] (!%p144_p8)  ;;  %s450_s13 = sld [smem:[#allocation3 + $0xd]] (!%p144_p8) }
  0x1d   : > { %s625_s17 = smov (!%p178_p9, %s524_s17), 1  ;;  %v232_v7 = vstv %s443_s22  ;;  %v235_v10 = vstv %s446_s23  ;;  %s451_s14 = sld [smem:[#allocation3 + $0xe]] }
  0x1e   : > { %s462_s24 = smul.u32 6, %s625_s17  ;;  %v237_v11 = vstv %s438_s25  ;;  %v239_v15 = vstv %s441_s29  ;;  %s452_s15 = sld [smem:[#allocation3 + $0xf]] }
  0x1f   : > { %v242_v16 = vstv %s444_s30  ;;  %v245_v26 = vstv %s447_s4  ;;  %s453_s16 = sld [smem:[#allocation3 + $0x10]]  ;;  %s454_s20 = sld [smem:[#allocation3 + $0x11]] }
  0x20   : > { %s185_s28 = scalar_lea.vmem %s617_s1, %s462_s24  ;;  %s193_s11 = scalar_lea.vmem %s618_s2, %s462_s24  ;;  %v247_v19 = vstv %s439_s5  ;;  %v249_v21 = vstv %s442_s6 }
  0x21   : > { %v582_v1 = vld [vmem:[%s185_s28] sm:$0x3]  ;;  %v584_v2 = vld [vmem:[%s185_s28 + $0x2] sm:$0x3]  ;;  %v586_v3 = vld [vmem:[%s185_s28 + $0x4] sm:$0x3]  ;;  %v252_v22 = vstv %s445_s7 }
  0x22   : > { %v228_v5 = vmul.f32 %v227_v0, %v582_v1  ;;  %v230_v6 = vmul.f32 %v584_v2, %v229_v4  ;;  %v233_v8 = vmul.f32 %v586_v3, %v232_v7  ;;  %v238_v13 = vmul.f32 %v237_v11, %v582_v1  ;;  %s455_s21 = sld [smem:[#allocation3 + $0x12]]  ;;  %s437_s22 = sshll.u32 %s625_s17, 1 }
  0x23   : > { %v240_v17 = vmul.f32 %v584_v2, %v239_v15  ;;  %v243_v18 = vmul.f32 %v586_v3, %v242_v16  ;;  %v248_v20 = vmul.f32 %v247_v19, %v582_v1  ;;  %v250_v24 = vmul.f32 %v584_v2, %v249_v21  ;;  %s200_s25 = scalar_lea.vmem %s619_s3, %s437_s22 }
  0x24   : > { %v231_v9 = vadd.f32 %v230_v6, %v228_v5  ;;  %v253_v25 = vmul.f32 %v586_v3, %v252_v22  ;;  %v255_v29 = vstv %s448_s8  ;;  %v280_v46 = vstv %s449_s12 }
  0x25   : > { %v241_v23 = vadd.f32 %v240_v17, %v238_v13  ;;  %v251_v28 = vadd.f32 %v250_v24, %v248_v20  ;;  %v282_v47 = vstv %s450_s13  ;;  %v281_v48 = vmul.f32 %v280_v46, %v582_v1 }
  0x26   : > { %v234_v12 = vadd.f32 %v233_v8, %v231_v9  ;;  %v283_v49 = vmul.f32 %v584_v2, %v282_v47  ;;  %v285_v50 = vstv %s451_s14  ;;  %v288_v54 = vstv %s452_s15 }
  0x27   : > { %v244_v27 = vadd.f32 %v243_v18, %v241_v23  ;;  %v254_v31 = vadd.f32 %v253_v25, %v251_v28  ;;  %v286_v51 = vmul.f32 %v586_v3, %v285_v50  ;;  %v291_v55 = vstv %s453_s16 }
  0x28   : > { %v236_v14 = vadd.f32 %v235_v10, %v234_v12  ;;  %v284_v52 = vadd.f32 %v283_v49, %v281_v48  ;;  %v294_v60 = vstv %s454_s20  ;;  %v297_v2 = vstv %s455_s21 }
  0x29   : > { %v246_v30 = vadd.f32 %v245_v26, %v244_v27  ;;  %v256_v33 = vadd.f32 %v255_v29, %v254_v31 }
  0x2a   : > { %257 = vst [vmem:[%s193_s11] sm:$0x3] %v236_v14  ;;  %v287_v59 = vadd.f32 %v286_v51, %v284_v52 }
  0x2b   : > { %458 = vst [vmem:[%s193_s11 + $0x2] sm:$0x3] %v246_v30  ;;  %v262_v32 = vmax.f32 %v236_v14, %v246_v30  ;;  %459 = vst [vmem:[%s193_s11 + $0x4] sm:$0x3] %v256_v33 }
  0x2d   : > { %v263_v34 = vmax.f32 %v262_v32, %v256_v33 }
  0x2f   : > { %v264_v35 = vsub.f32 %v236_v14, %v263_v34  ;;  %v267_v36 = vsub.f32 %v246_v30, %v263_v34  ;;  %v270_v37 = vsub.f32 %v256_v33, %v263_v34 }
  0x31   : > { %v265_v38 = vmul.f32 1.442695, %v264_v35  ;;  %v268_v39 = vmul.f32 1.442695, %v267_v36  ;;  %v271_v40 = vmul.f32 1.442695, %v270_v37 }
  0x33   : > { %488 = vpow2.f32 %v265_v38 }
  0x34   : > { %490 = vpow2.f32 %v268_v39 }
  0x35   : > { %492 = vpow2.f32 %v271_v40 }
  0x3d   : > { %v489_v41 = vpop.eup %488 }
  0x3e   : > { %v491_v42 = vpop.eup %490 }
  0x3f   : > { %v493_v43 = vpop.eup %492  ;;  %v273_v44 = vadd.f32 %v491_v42, %v489_v41 }
  0x41   : > { %v274_v45 = vadd.f32 %v493_v43, %v273_v44 }
  0x43   : > { %494 = vrcp.f32 %v274_v45 }
  0x4d   : > { %v495_v53 = vpop.eup %494 }
  0x4e   : > { %v277_v56 = vmul.f32 %v495_v53, %v489_v41  ;;  %v278_v57 = vmul.f32 %v495_v53, %v491_v42  ;;  %v279_v58 = vmul.f32 %v495_v53, %v493_v43 }
  0x50   : > { %v289_v61 = vmul.f32 %v288_v54, %v277_v56  ;;  %v292_v62 = vmul.f32 %v291_v55, %v278_v57  ;;  %v295_v0 = vmul.f32 %v294_v60, %v279_v58 }
  0x52   : > { %v290_v63 = vadd.f32 %v289_v61, %v287_v59 }
  0x54   : > { %v293_v1 = vadd.f32 %v292_v62, %v290_v63 }
  0x56   : > { %v296_v4 = vadd.f32 %v295_v0, %v293_v1 }
  0x58   : > { %v298_v3 = vadd.f32 %v297_v2, %v296_v4 }
  0x5a   : > { %v299_v5 = vmul.f32 %v298_v3, %v279_v58 }
  0x5c   : > { %v300_v6 = vadd.f32 %v299_v5, %v278_v57 }
  0x5e   : > { %301 = vst [vmem:[%s200_s25] sm:$0x3] %v300_v6 }
  0x5f PF: > { %s20_s19 = sadd.s32 1, %s532_s19   ;;  %s620_s17 = smov %s528_s18 }
  0x60   : > { %p17_p10 = scmp.ge.s32.totalorder %s20_s19, 4   ;;  %s621_s18 = smov %s623_s0 }
  0x62   :  { %19 = sbr.rel (!%p17_p10) target bundleno = 17 (0x11), region = 70 }

</bundles_post_ra>
